<compile_context>
chip_gen: v6e
topology: v6e:2x2x1
jax: 0.10.0
libtpu: 0.0.40
codegen_flags: <defaults>
</compile_context>

<pallas_src>
import functools
import math

import jax
import jax.numpy as jnp
from jax.experimental import pallas as pl
from jax.experimental.pallas import tpu as pltpu


def _round_up(x, m):
    return ((x + m - 1) // m) * m


def _agg_kernel(a_ref, y_ref, b_ref, o_ref, acc_ref, *, relu, tk, y_resident):
    """One output row tile of act(A @ Y + b); A is int8 0/1, upcast to bf16."""
    k = pl.program_id(1)

    @pl.when(k == 0)
    def _():
        acc_ref[...] = jnp.zeros_like(acc_ref)

    # int8 (0/1) -> f32 -> bf16 is exact; the VPU cast hides under the DMA stall
    # and the int8 HBM stream is half the bf16 one.
    a_blk = a_ref[...].astype(jnp.float32).astype(jnp.bfloat16)
    if y_resident:
        # Y lives fully in VMEM (fetched once); slice the current k-tile.
        start = pl.multiple_of(k * tk, tk)
        y_blk = y_ref[pl.ds(start, tk), :]
    else:
        y_blk = y_ref[...]
    acc_ref[...] += jnp.dot(a_blk, y_blk, preferred_element_type=jnp.float32)

    @pl.when(k == pl.num_programs(1) - 1)
    def _():
        h = acc_ref[...] + b_ref[...]          # bias / relu stay f32 (v5e-safe)
        if relu:
            h = jnp.maximum(h, 0.0)
        o_ref[...] = h.astype(o_ref.dtype)     # 128-lane-dense unmasked store


# Budget for keeping Y fully VMEM-resident (double-buffered bf16), leaving
# headroom for A/out tiles inside v7x's 64 MiB/TC VMEM.
_Y_RESIDENT_BYTES = 16 * 1024 * 1024


def gcn_aggregate(adj_i8, y_bf16, bias_f32, *, relu, out_dtype, tm, tk):
    """act(A @ Y + b) on pre-padded inputs.

    adj_i8: (Np, Np) int8 0/1;  y_bf16: (Np, Dp) bf16;  bias_f32: (1, Dp) f32.
    Np % tm == Np % tk == 0, Dp % 128 == 0.  Returns (Np, Dp) out_dtype."""
    n = adj_i8.shape[0]
    d = y_bf16.shape[1]
    assert n % tm == 0 and n % tk == 0 and d % 128 == 0

    y_resident = 2 * n * d * 2 <= _Y_RESIDENT_BYTES
    if y_resident:
        y_spec = pl.BlockSpec((n, d), lambda i, k: (0, 0))    # fetched once
        y_bytes = n * d * 2
    else:
        y_spec = pl.BlockSpec((tk, d), lambda i, k: (k, 0))   # re-streamed per row tile
        y_bytes = (n // tm) * n * d * 2

    flops = 2 * n * n * d
    bytes_accessed = (n * n                                    # int8 A
                      + y_bytes
                      + d * 4
                      + n * d * jnp.dtype(out_dtype).itemsize)

    return pl.pallas_call(
        functools.partial(_agg_kernel, relu=relu, tk=tk, y_resident=y_resident),
        out_shape=jax.ShapeDtypeStruct((n, d), out_dtype),
        grid_spec=pltpu.PrefetchScalarGridSpec(
            num_scalar_prefetch=0,
            grid=(n // tm, n // tk),
            in_specs=[
                pl.BlockSpec((tm, tk), lambda i, k: (i, k)),   # int8 A tile
                y_spec,                                        # Y (resident/stream)
                pl.BlockSpec((1, d), lambda i, k: (0, 0)),     # bias (resident)
            ],
            out_specs=pl.BlockSpec((tm, d), lambda i, k: (i, 0)),
            scratch_shapes=[pltpu.VMEM((tm, d), jnp.float32)],
        ),
        compiler_params=pltpu.CompilerParams(
            dimension_semantics=("parallel", "arbitrary"),
            vmem_limit_bytes=48 * 1024 * 1024,   # headroom on v7x (64 MiB phys)
        ),
        cost_estimate=pl.CostEstimate(flops=flops, transcendentals=0,
                                      bytes_accessed=bytes_accessed),
    )(adj_i8, y_bf16, bias_f32)


def gcn_forward(adj, feats, w1, b1, w2, b2, *, tm=512, tk=512):
    """adj: (N, N) dense 0/1 adjacency; feats: (N, F) f32.
    w1: (F, H) (torch Linear weight transposed), b1: (1, H) or (H,);
    w2: (H, C), b2: (1, C) or (C,).  Returns (N, C) f32 logits."""
    n = adj.shape[0]
    hdim = w1.shape[1]
    c = w2.shape[1]

    h_p = _round_up(hdim, 128)
    c_p = _round_up(c, 128)

    # 256-aligned tiles (v6e/v7x MXU is 2x256x256); clamp for tiny graphs and
    # pad N so both the row tile and the reduction tile divide it.
    n_p = _round_up(n, 256)
    tm = min(tm, n_p)
    tk = min(tk, n_p)
    n_p = _round_up(n_p, math.lcm(tm, tk))

    def pad2(arr, rows, cols, dtype):
        arr = arr.astype(dtype)
        return jnp.pad(arr, ((0, rows - arr.shape[0]), (0, cols - arr.shape[1])))

    # 0/1 adjacency stored as int8 (exact); upcast to bf16 inside the kernel.
    a_i8 = pad2(adj, n_p, n_p, jnp.int8)

    # Tiny dense projections (N x <=128) run in plain XLA: A @ (X W) == (A @ X) W.
    y1 = jnp.dot(feats.astype(jnp.float32), w1.astype(jnp.float32))
    y1_p = pad2(y1, n_p, h_p, jnp.bfloat16)
    b1_p = pad2(b1.reshape(1, -1), 1, h_p, jnp.float32)
    w2_p = pad2(w2, h_p, c_p, jnp.float32)
    b2_p = pad2(b2.reshape(1, -1), 1, c_p, jnp.float32)

    # Layer 1: h1 = relu(A @ Y1 + b1), kept in f32 (no bf16 rounding of the
    # neighborhood sums).  Padded rows would be relu(b1); A's zero-padded
    # columns already neutralize them, but zero explicitly for robustness.
    h1 = gcn_aggregate(a_i8, y1_p, b1_p, relu=True, out_dtype=jnp.float32,
                       tm=tm, tk=tk)
    h1 = jnp.where((jnp.arange(n_p) < n)[:, None], h1, 0.0)

    # Layer 2: out = A @ (h1 W2) + b2.
    y2 = jnp.dot(h1, w2_p).astype(jnp.bfloat16)
    out = gcn_aggregate(a_i8, y2, b2_p, relu=False, out_dtype=jnp.float32,
                        tm=tm, tk=tk)
    return out[:n, :c]


def gcn_reference(adj, feats, w1, b1, w2, b2):
    """Pure-JAX reference mirroring the kernel's bf16-MXU / f32-accumulate math."""
    a = adj.astype(jnp.bfloat16)
    y1 = jnp.dot(feats.astype(jnp.float32), w1.astype(jnp.float32)).astype(jnp.bfloat16)
    h1 = jnp.dot(a, y1, preferred_element_type=jnp.float32) + b1.reshape(1, -1)
    h1 = jnp.maximum(h1, 0.0)
    y2 = jnp.dot(h1, w2.astype(jnp.float32)).astype(jnp.bfloat16)
    out = jnp.dot(a, y2, preferred_element_type=jnp.float32) + b2.reshape(1, -1)
    return out


if __name__ == "__main__":
    # Small synthetic graph (Karate-club-like). N deliberately not a multiple of
    # the tile size to exercise the padding path; widths match the module.
    N, F_IN, HIDDEN, NUM_CLASSES = 200, 8, 32, 2

    key = jax.random.PRNGKey(0)
    k_adj, k_x, k_w1, k_b1, k_w2, k_b2 = jax.random.split(key, 6)

    # Random undirected 0/1 adjacency, self-edges removed.
    adj_rand = jax.random.uniform(k_adj, (N, N)) < 0.3
    adj = jnp.logical_or(adj_rand, adj_rand.T).astype(jnp.float32)
    adj = adj * (1.0 - jnp.eye(N, dtype=jnp.float32))

    feats = jax.random.normal(k_x, (N, F_IN), dtype=jnp.float32)

    # torch Linear weight (out, in) stored transposed as (in, out).
    w1 = jax.random.normal(k_w1, (F_IN, HIDDEN), dtype=jnp.float32) * 0.1
    b1 = jax.random.normal(k_b1, (1, HIDDEN), dtype=jnp.float32) * 0.1
    w2 = jax.random.normal(k_w2, (HIDDEN, NUM_CLASSES), dtype=jnp.float32) * 0.1
    b2 = jax.random.normal(k_b2, (1, NUM_CLASSES), dtype=jnp.float32) * 0.1

    out = jax.block_until_ready(gcn_forward(adj, feats, w1, b1, w2, b2))
    ref = gcn_reference(adj, feats, w1, b1, w2, b2)

    assert out.shape == (N, NUM_CLASSES)
    max_err = float(jnp.max(jnp.abs(out - ref)))
    assert jnp.allclose(out, ref, atol=2e-2, rtol=2e-2), max_err

    print("KERNEL_OK")
</pallas_src>

<mosaic_0001>
module attributes {stable_mosaic.version = 11 : i64} {
  func.func @_agg_kernel(%arg0: i32, %arg1: i32, %arg2: memref<256x256xi8, #tpu.memory_space<vmem>>, %arg3: memref<256x128xbf16, #tpu.memory_space<vmem>>, %arg4: memref<1x128xf32, #tpu.memory_space<vmem>>, %arg5: memref<256x128xf32, #tpu.memory_space<vmem>>, %arg6: memref<256x128xf32, #tpu.memory_space<vmem>>) attributes {dimension_semantics = [#tpu.dimension_semantics<parallel>, #tpu.dimension_semantics<arbitrary>], iteration_bounds = array<i64: 1, 1>, scalar_prefetch = 0 : i64, scratch_operands = 1 : i64, tpu.core_type = #tpu.core_type<tc>, window_params = [{transform_indices = @transform_0, window_bounds = array<i64: 256, 256>}, {pipeline_mode = #tpu.pipeline_mode<synchronous>, transform_indices = @transform_1, window_bounds = array<i64: 256, 128>}, {pipeline_mode = #tpu.pipeline_mode<synchronous>, transform_indices = @transform_2, window_bounds = array<i64: 1, 128>}, {transform_indices = @transform_3, window_bounds = array<i64: 256, 128>}]} {
    %c0_i32 = arith.constant 0 : i32
    %0 = arith.cmpi eq, %arg1, %c0_i32 : i32
    %1 = arith.extui %0 : i1 to i32
    %c0_i32_0 = arith.constant 0 : i32
    %2 = arith.cmpi ne, %1, %c0_i32_0 : i32
    scf.if %2 {
      %cst_9 = arith.constant 0.000000e+00 : f32
      %17 = vector.broadcast %cst_9 : f32 to vector<256x128xf32>
      %c0_10 = arith.constant 0 : index
      %c0_11 = arith.constant 0 : index
      %18 = vector.load %arg6[%c0_10, %c0_11] : memref<256x128xf32, #tpu.memory_space<vmem>>, vector<256x128xf32>
      tpu.vector_store %arg6[%c0_10, %c0_11], %17 {strides = array<i32>} : memref<256x128xf32, #tpu.memory_space<vmem>>, vector<256x128xf32>,
    } else {
    }
    %c0 = arith.constant 0 : index
    %c0_1 = arith.constant 0 : index
    %3 = vector.load %arg2[%c0, %c0_1] : memref<256x256xi8, #tpu.memory_space<vmem>>, vector<256x256xi8>
    %4 = arith.sitofp %3 : vector<256x256xi8> to vector<256x256xf32>
    %5 = arith.truncf %4 : vector<256x256xf32> to vector<256x256xbf16>
    %c256_i32 = arith.constant 256 : i32
    %6 = arith.muli %arg1, %c256_i32 : i32
    %7 = tpu.assume_multiple %6, 256 : i32
    %8 = arith.index_cast %7 : i32 to index
    %c0_2 = arith.constant 0 : index
    %9 = vector.load %arg3[%8, %c0_2] : memref<256x128xbf16, #tpu.memory_space<vmem>>, vector<256x128xbf16>
    %c0_3 = arith.constant 0 : index
    %c0_4 = arith.constant 0 : index
    %10 = vector.load %arg6[%c0_3, %c0_4] : memref<256x128xf32, #tpu.memory_space<vmem>>, vector<256x128xf32>
    %cst = arith.constant dense<0.000000e+00> : vector<256x128xf32>
    %11 = tpu.matmul %5, %9, %cst {dimension_numbers = #tpu.dot_dimension_numbers<[1], [0], [0], [1], [0, 0, 1, 1], [], []>} : vector<256x256xbf16>, vector<256x128xbf16>, vector<256x128xf32> -> vector<256x128xf32>
    %12 = arith.addf %10, %11 : vector<256x128xf32>
    %c0_5 = arith.constant 0 : index
    %c0_6 = arith.constant 0 : index
    %13 = vector.load %arg6[%c0_5, %c0_6] : memref<256x128xf32, #tpu.memory_space<vmem>>, vector<256x128xf32>
    tpu.vector_store %arg6[%c0_5, %c0_6], %12 {strides = array<i32>} : memref<256x128xf32, #tpu.memory_space<vmem>>, vector<256x128xf32>,
    %c0_i32_7 = arith.constant 0 : i32
    %14 = arith.cmpi eq, %arg1, %c0_i32_7 : i32
    %15 = arith.extui %14 : i1 to i32
    %c0_i32_8 = arith.constant 0 : i32
    %16 = arith.cmpi ne, %15, %c0_i32_8 : i32
    scf.if %16 {
      %c0_9 = arith.constant 0 : index
      %c0_10 = arith.constant 0 : index
      %17 = vector.load %arg6[%c0_9, %c0_10] : memref<256x128xf32, #tpu.memory_space<vmem>>, vector<256x128xf32>
      %c0_11 = arith.constant 0 : index
      %c0_12 = arith.constant 0 : index
      %18 = vector.load %arg4[%c0_11, %c0_12] : memref<1x128xf32, #tpu.memory_space<vmem>>, vector<1x128xf32>
      %19 = vector.broadcast %18 : vector<1x128xf32> to vector<256x128xf32>
      %20 = arith.addf %17, %19 : vector<256x128xf32>
      %cst_13 = arith.constant 0.000000e+00 : f32
      %21 = vector.broadcast %cst_13 : f32 to vector<256x128xf32>
      %22 = arith.maximumf %20, %21 : vector<256x128xf32>
      %c0_14 = arith.constant 0 : index
      %c0_15 = arith.constant 0 : index
      %23 = vector.load %arg5[%c0_14, %c0_15] : memref<256x128xf32, #tpu.memory_space<vmem>>, vector<256x128xf32>
      tpu.vector_store %arg5[%c0_14, %c0_15], %22 {strides = array<i32>} : memref<256x128xf32, #tpu.memory_space<vmem>>, vector<256x128xf32>,
    } else {
    }
    return
  }
  func.func @transform_0(%arg0: i32, %arg1: i32) -> (i32, i32) {
    %c0_i32 = arith.constant 0 : i32
    return %arg0, %arg1 : i32, i32
  }
  func.func @transform_1(%arg0: i32, %arg1: i32) -> (i32, i32) {
    %c0_i32 = arith.constant 0 : i32
    %c0_i32_0 = arith.constant 0 : i32
    %c0_i32_1 = arith.constant 0 : i32
    return %c0_i32, %c0_i32_0 : i32, i32
  }
  func.func @transform_2(%arg0: i32, %arg1: i32) -> (i32, i32) {
    %c0_i32 = arith.constant 0 : i32
    %c0_i32_0 = arith.constant 0 : i32
    %c0_i32_1 = arith.constant 0 : i32
    return %c0_i32, %c0_i32_0 : i32, i32
  }
  func.func @transform_3(%arg0: i32, %arg1: i32) -> (i32, i32) {
    %c0_i32 = arith.constant 0 : i32
    %c0_i32_0 = arith.constant 0 : i32
    return %arg0, %c0_i32 : i32, i32
  }
}

</mosaic_0001>

<bundles_post_ra>
// kernel: tpu_custom_call.1
= control target key start
LH: loop header
LB: loop body
LE: loop exit
PB: predicated region body
PF: predicated region fallthrough
CT: control target
= control target key end

     0   :  { %8 = vsyncpa [#allocation4], 0  ;;  %s987_s0 = inlined_call_operand.hbm [shape: s8[256,256], index: 0, kind: input, shape index: {}]   ;;  %s988_s1 = inlined_call_operand.hbm [shape: bf16[256,128], index: 1, kind: input, shape index: {}]   ;;  %s989_s2 = inlined_call_operand.vmem [shape: f32[1,128], index: 2, kind: input, shape index: {}]   ;;  %s990_s3 = inlined_call_operand.hbm [shape: f32[256,128], index: 3, kind: output, shape index: {}]  }
   0x1   :  { %9 = vsyncpa [#allocation7], 0 }
   0x2   :  { %10 = vsyncpa [#allocation5], 0  ;;  %s912_s12 = smov [#allocation3]  }
   0x3   :  { %s16_s13 = sshll.u32 %s912_s12, 4  ;;  %s17_s13 = int_to_ptr.vmem [resolvable:$true] %s16_s13 }
   0x4   :  { %s854_s14 = scalar_lea.vmem %s17_s13, 2048  ;;  %p859_p1 = scmp.lt.s32.totalorder %s17_s13, %s17_s13 }
   0x5   :  { %p855_p0 = scmp.ne.s32.totalorder %s17_s13, %s854_s14  ;;  %p860_p2 = scmp.lt.s32.totalorder %s854_s14, %s854_s14 }
   0x7   :  { %p861_p3 = por %p860_p2, %p859_p1 }
   0x9   :  { %p862_p4 = pnand %p861_p3, %p855_p0 }
   0xb   :  { %865 = shalt.err (!%p862_p4)
}
   0xc   :  { %s913_s15 = smov 256   ;;  %s914_s16 = smov 16  }
   0xd   :  { %22 = dma.hbm_to_vmem [thread:$0]  %s987_s0, 2048, %s17_s13, [#allocation4], %s913_s15, %s913_s15, %s914_s16  }
   0xe   :  { %s915_s19 = smov [#allocation6]  }
   0xf   :  { %s28_s20 = sshll.u32 %s915_s19, 4  ;;  %s29_s20 = int_to_ptr.vmem [resolvable:$true] %s28_s20 }
  0x10   :  { %s874_s21 = scalar_lea.vmem %s29_s20, 2048  ;;  %p879_p6 = scmp.lt.s32.totalorder %s29_s20, %s29_s20 }
  0x11   :  { %p875_p5 = scmp.ne.s32.totalorder %s29_s20, %s874_s21  ;;  %p880_p7 = scmp.lt.s32.totalorder %s874_s21, %s874_s21 }
  0x13   :  { %p881_p8 = por %p880_p7, %p879_p6 }
  0x15   :  { %p882_p9 = pnand %p881_p8, %p875_p5 }
  0x17   :  { %885 = shalt.err (!%p882_p9)
}
  0x18   :  { %s916_s22 = smov 64   ;;  %s917_s23 = smov 4  }
  0x19   :  { %34 = dma.hbm_to_vmem [thread:$0]  %s988_s1, 2048, %s29_s20, [#allocation7], %s916_s22, %s916_s22, %s917_s23  }
  0x1a   :  { %906 = dma.done.wait [#allocation4], 2048  }
  0x1b   :  { %907 = vsyncadd [#allocation4], 4294965248 }
  0x1c   :  { %908 = dma.done.wait [#allocation7], 2048  }
  0x1d   :  { %909 = vsyncadd [#allocation7], 4294965248  ;;  %v830_v0 = vld [vmem:[#allocation6 + $0x78] sm:$0xff]   ;;  %v832_v2 = vld [vmem:[#allocation6 + $0x70] sm:$0xff]  }
  0x1e   :  { %v831_v1 = vld [vmem:[#allocation6 + $0x38] sm:$0xff]   ;;  %693 = vmatprep.subr.bf16.mxu0 %v830_v0  ;;  %805 = vmatprep.subr.bf16.mxu1 %v830_v0  ;;  %v833_v3 = vld [vmem:[#allocation6 + $0x30] sm:$0xff]   ;;  %v834_v4 = vld [vmem:[#allocation6 + $0x68] sm:$0xff]  }
  0x1f   :  { %694 = vmatpush3.bf16.msra.mxu0 %v831_v1  ;;  %813 = vmatpush3.bf16.msra.mxu1 %v831_v1  ;;  %v835_v5 = vld [vmem:[#allocation6 + $0x28] sm:$0xff]   ;;  %v836_v6 = vld [vmem:[#allocation6 + $0x60] sm:$0xff]   ;;  %v838_v8 = vld [vmem:[#allocation6 + $0x58] sm:$0xff]  }
  0x20   :  { %695 = vmatprep.subr.bf16.mxu0 %v832_v2  ;;  %806 = vmatprep.subr.bf16.mxu1 %v832_v2  ;;  %v837_v7 = vld [vmem:[#allocation6 + $0x20] sm:$0xff]   ;;  %v839_v9 = vld [vmem:[#allocation6 + $0x18] sm:$0xff]   ;;  %v840_v10 = vld [vmem:[#allocation6 + $0x50] sm:$0xff]  }
  0x21   :  { %v81_v11 = vld [vmem:[#allocation3 + $0x8] sm:$0xff]  ;;  %v841_v15 = vld [vmem:[#allocation6 + $0x10] sm:$0xff]   ;;  %v844_v18 = vld [vmem:[#allocation6 + $0x40] sm:$0xff]  }
  0x22   :  { %v89_v12 = vld [vmem:[#allocation3 + $0x48] sm:$0xff]  ;;  %v97_v13 = vunpack.c.l.s8.bf16 %v81_v11  ;;  %v845_v19 = vld [vmem:[#allocation6] sm:$0xff]   ;;  %v99_v24 = vunpack.c.h.s8.bf16 %v81_v11  ;;  %v83_v26 = vld [vmem:[#allocation3 + $0x18] sm:$0xff] }
  0x23   :  { %696 = vmatpush3.bf16.msra.mxu0 %v833_v3  ;;  %814 = vmatpush3.bf16.msra.mxu1 %v833_v3  ;;  %v113_v14 = vunpack.c.l.s8.bf16 %v89_v12  ;;  %v842_v16 = vld [vmem:[#allocation6 + $0x48] sm:$0xff]   ;;  %v80_v20 = vld [vmem:[#allocation3] sm:$0xff]  ;;  %v115_v25 = vunpack.c.h.s8.bf16 %v89_v12  ;;  %v91_v27 = vld [vmem:[#allocation3 + $0x58] sm:$0xff]  ;;  %v101_v30 = vunpack.c.l.s8.bf16 %v83_v26  ;;  %v103_v36 = vunpack.c.h.s8.bf16 %v83_v26 }
  0x24   :  { %697 = vmatprep.subr.bf16.mxu0 %v834_v4  ;;  %807 = vmatprep.subr.bf16.mxu1 %v834_v4  ;;  %v843_v17 = vld [vmem:[#allocation6 + $0x8] sm:$0xff]   ;;  %v88_v21 = vld [vmem:[#allocation3 + $0x40] sm:$0xff]  ;;  %v96_v22 = vunpack.c.l.s8.bf16 %v80_v20  ;;  %v98_v28 = vunpack.c.h.s8.bf16 %v80_v20  ;;  %v117_v31 = vunpack.c.l.s8.bf16 %v91_v27  ;;  %v82_v32 = vld [vmem:[#allocation3 + $0x10] sm:$0xff]  ;;  %v119_v37 = vunpack.c.h.s8.bf16 %v91_v27 }
  0x25   :  { %325 = vmatprep.mubr.bf16.mxu0 %v97_v13  ;;  %389 = vmatprep.mubr.bf16.mxu1 %v113_v14  ;;  %v112_v23 = vunpack.c.l.s8.bf16 %v88_v21  ;;  %v114_v29 = vunpack.c.h.s8.bf16 %v88_v21  ;;  %v90_v33 = vld [vmem:[#allocation3 + $0x50] sm:$0xff]  ;;  %v100_v34 = vunpack.c.l.s8.bf16 %v82_v32  ;;  %v85_v38 = vld [vmem:[#allocation3 + $0x28] sm:$0xff]  ;;  %v102_v40 = vunpack.c.h.s8.bf16 %v82_v32  ;;  %v84_v44 = vld [vmem:[#allocation3 + $0x20] sm:$0xff] }
  0x26   :  { %v116_v35 = vunpack.c.l.s8.bf16 %v90_v33  ;;  %v93_v39 = vld [vmem:[#allocation3 + $0x68] sm:$0xff]  ;;  %v118_v41 = vunpack.c.h.s8.bf16 %v90_v33  ;;  %v105_v42 = vunpack.c.l.s8.bf16 %v85_v38  ;;  %v92_v45 = vld [vmem:[#allocation3 + $0x60] sm:$0xff]  ;;  %v104_v46 = vunpack.c.l.s8.bf16 %v84_v44  ;;  %v87_v50 = vld [vmem:[#allocation3 + $0x38] sm:$0xff] }
  0x27   :  { %698 = vmatpush3.bf16.msra.mxu0 %v835_v5  ;;  %815 = vmatpush3.bf16.msra.mxu1 %v835_v5  ;;  %v121_v43 = vunpack.c.l.s8.bf16 %v93_v39  ;;  %v120_v47 = vunpack.c.l.s8.bf16 %v92_v45  ;;  %v107_v48 = vunpack.c.h.s8.bf16 %v85_v38  ;;  %v123_v49 = vunpack.c.h.s8.bf16 %v93_v39  ;;  %v95_v51 = vld [vmem:[#allocation3 + $0x78] sm:$0xff]  ;;  %v86_v56 = vld [vmem:[#allocation3 + $0x30] sm:$0xff]  ;;  %v950_v3 = vld [vmem:[%s989_s2] ss:$0 sm:$0xff]  ;;  %s918_s2 = smov [#allocation8]  }
  0x28   :  { %699 = vmatprep.subr.bf16.mxu0 %v836_v6  ;;  %808 = vmatprep.subr.bf16.mxu1 %v836_v6  ;;  %v106_v52 = vunpack.c.h.s8.bf16 %v84_v44  ;;  %v122_v53 = vunpack.c.h.s8.bf16 %v92_v45  ;;  %v109_v54 = vunpack.c.l.s8.bf16 %v87_v50  ;;  %v125_v55 = vunpack.c.l.s8.bf16 %v95_v51  ;;  %v94_v57 = vld [vmem:[#allocation3 + $0x70] sm:$0xff]  ;;  %s661_s26 = sshll.u32 %s918_s2, 4  ;;  %s662_s26 = int_to_ptr.vmem [resolvable:$true] %s661_s26 }
  0x29   :  { %v108_v58 = vunpack.c.l.s8.bf16 %v86_v56  ;;  %v124_v59 = vunpack.c.l.s8.bf16 %v94_v57  ;;  %v111_v60 = vunpack.c.h.s8.bf16 %v87_v50  ;;  %v127_v61 = vunpack.c.h.s8.bf16 %v95_v51  ;;  %s886_s27 = scalar_lea.vmem %s662_s26, 4096  ;;  %p891_p11 = scmp.lt.s32.totalorder %s662_s26, %s662_s26 }
  0x2a   :  { %v110_v62 = vunpack.c.h.s8.bf16 %v86_v56  ;;  %v126_v63 = vunpack.c.h.s8.bf16 %v94_v57  ;;  %p887_p10 = scmp.ne.s32.totalorder %s662_s26, %s886_s27  ;;  %p892_p12 = scmp.lt.s32.totalorder %s886_s27, %s886_s27 }
  0x2b   :  { %700 = vmatpush3.bf16.msra.mxu0 %v837_v7  ;;  %816 = vmatpush3.bf16.msra.mxu1 %v837_v7 }
  0x2c   :  { %701 = vmatprep.subr.bf16.mxu0 %v838_v8  ;;  %809 = vmatprep.subr.bf16.mxu1 %v838_v8  ;;  %p893_p13 = por %p892_p12, %p891_p11 }
  0x2e   :  { %p894_p0 = pnand %p893_p13, %p887_p10 }
  0x2f   :  { %702 = vmatpush3.bf16.msra.mxu0 %v839_v9  ;;  %817 = vmatpush3.bf16.msra.mxu1 %v839_v9 }
  0x30   :  { %703 = vmatprep.subr.bf16.mxu0 %v840_v10  ;;  %810 = vmatprep.subr.bf16.mxu1 %v840_v10 }
  0x33   :  { %704 = vmatpush3.bf16.msra.mxu0 %v841_v15  ;;  %818 = vmatpush3.bf16.msra.mxu1 %v841_v15 }
  0x34   :  { %705 = vmatprep.subr.bf16.mxu0 %v842_v16  ;;  %811 = vmatprep.subr.bf16.mxu1 %v842_v16 }
  0x37   :  { %706 = vmatpush3.bf16.msra.mxu0 %v843_v17  ;;  %819 = vmatpush3.bf16.msra.mxu1 %v843_v17 }
  0x38   :  { %707 = vmatprep.subr.bf16.mxu0 %v844_v18  ;;  %812 = vmatprep.subr.bf16.mxu1 %v844_v18 }
  0x3b   :  { %708 = vmatpush3.bf16.msra.mxu0 %v845_v19  ;;  %820 = vmatpush3.bf16.msra.mxu1 %v845_v19 }
  0x3e   :  { %326 = vmatmul.mubr.bf16.vlgmr.msra.gmra.mxu0 %v96_v22  ;;  %390 = vmatmul.mubr.bf16.vlgmr.msra.gmra.mxu1 %v112_v23 }
  0x3f   :  { %333 = vmatprep.mubr.bf16.mxu0 %v99_v24  ;;  %397 = vmatprep.mubr.bf16.mxu1 %v115_v25 }
  0x46   :  { %334 = vmatmul.mubr.bf16.gmra.mxu0 %v98_v28  ;;  %398 = vmatmul.mubr.bf16.gmra.mxu1 %v114_v29 }
  0x47   :  { %341 = vmatprep.mubr.bf16.mxu0 %v101_v30  ;;  %405 = vmatprep.mubr.bf16.mxu1 %v117_v31 }
  0x4e   :  { %342 = vmatmul.mubr.bf16.gmra.mxu0 %v100_v34  ;;  %406 = vmatmul.mubr.bf16.gmra.mxu1 %v116_v35 }
  0x4f   :  { %349 = vmatprep.mubr.bf16.mxu0 %v103_v36  ;;  %413 = vmatprep.mubr.bf16.mxu1 %v119_v37 }
  0x56   :  { %350 = vmatmul.mubr.bf16.gmra.mxu0 %v102_v40  ;;  %414 = vmatmul.mubr.bf16.gmra.mxu1 %v118_v41 }
  0x57   :  { %357 = vmatprep.mubr.bf16.mxu0 %v105_v42  ;;  %421 = vmatprep.mubr.bf16.mxu1 %v121_v43 }
  0x5e   :  { %358 = vmatmul.mubr.bf16.gmra.mxu0 %v104_v46  ;;  %422 = vmatmul.mubr.bf16.gmra.mxu1 %v120_v47 }
  0x5f   :  { %365 = vmatprep.mubr.bf16.mxu0 %v107_v48  ;;  %429 = vmatprep.mubr.bf16.mxu1 %v123_v49 }
  0x66   :  { %366 = vmatmul.mubr.bf16.gmra.mxu0 %v106_v52  ;;  %430 = vmatmul.mubr.bf16.gmra.mxu1 %v122_v53 }
  0x67   :  { %373 = vmatprep.mubr.bf16.mxu0 %v109_v54  ;;  %437 = vmatprep.mubr.bf16.mxu1 %v125_v55 }
  0x6e   :  { %374 = vmatmul.mubr.bf16.gmra.mxu0 %v108_v58  ;;  %438 = vmatmul.mubr.bf16.gmra.mxu1 %v124_v59 }
  0x6f   :  { %381 = vmatprep.mubr.bf16.mxu0 %v111_v60  ;;  %445 = vmatprep.mubr.bf16.mxu1 %v127_v61 }
  0x76   :  { %382 = vmatmul.mubr.bf16.gmra.mxu0 %v110_v62  ;;  %446 = vmatmul.mubr.bf16.gmra.mxu1 %v126_v63 }
  0xfe   :  { %v709_v0 = vpop.f32.mrf.mxu0  ;;  %v757_v1 = vpop.f32.mrf.mxu1 }
 0x100   :  { %v710_v2 = vpop.f32.mrf.mxu0  ;;  %v758_v4 = vpop.f32.mrf.mxu1 }
 0x101   :  { %v711_v5 = vadd.f32 %v710_v2, %v709_v0  ;;  %v759_v6 = vadd.f32 %v758_v4, %v757_v1 }
 0x102   :  { %v712_v7 = vpop.f32.mrf.mxu0  ;;  %v760_v8 = vpop.f32.mrf.mxu1 }
 0x103   :  { %v560_v9 = vadd.f32 %v711_v5, %v950_v3  ;;  %v576_v10 = vadd.f32 %v759_v6, %v950_v3 }
 0x104   :  { %v713_v11 = vpop.f32.mrf.mxu0  ;;  %v761_v12 = vpop.f32.mrf.mxu1 }
 0x105   :  { %v592_v13 = vmax.f32 %v560_v9, 0.0  ;;  %v608_v14 = vmax.f32 %v576_v10, 0.0  ;;  %v714_v15 = vadd.f32 %v713_v11, %v712_v7  ;;  %v762_v16 = vadd.f32 %v761_v12, %v760_v8 }
 0x106   :  { %v715_v17 = vpop.f32.mrf.mxu0  ;;  %v763_v18 = vpop.f32.mrf.mxu1 }
 0x107   :  { %624 = vst [vmem:[#allocation8] sm:$0xff] %v592_v13  ;;  %640 = vst [vmem:[#allocation8 + $0x80] sm:$0xff] %v608_v14  ;;  %v561_v19 = vadd.f32 %v714_v15, %v950_v3  ;;  %v577_v20 = vadd.f32 %v762_v16, %v950_v3 }
 0x108   :  { %v716_v21 = vpop.f32.mrf.mxu0  ;;  %v764_v22 = vpop.f32.mrf.mxu1 }
 0x109   :  { %v593_v23 = vmax.f32 %v561_v19, 0.0  ;;  %v609_v24 = vmax.f32 %v577_v20, 0.0  ;;  %v717_v25 = vadd.f32 %v716_v21, %v715_v17  ;;  %v765_v26 = vadd.f32 %v764_v22, %v763_v18 }
 0x10a   :  { %v718_v27 = vpop.f32.mrf.mxu0  ;;  %v766_v28 = vpop.f32.mrf.mxu1 }
 0x10b   :  { %625 = vst [vmem:[#allocation8 + $0x8] sm:$0xff] %v593_v23  ;;  %641 = vst [vmem:[#allocation8 + $0x88] sm:$0xff] %v609_v24  ;;  %v562_v29 = vadd.f32 %v717_v25, %v950_v3  ;;  %v578_v30 = vadd.f32 %v765_v26, %v950_v3 }
 0x10c   :  { %v719_v31 = vpop.f32.mrf.mxu0  ;;  %v767_v32 = vpop.f32.mrf.mxu1 }
 0x10d   :  { %v594_v33 = vmax.f32 %v562_v29, 0.0  ;;  %v610_v34 = vmax.f32 %v578_v30, 0.0  ;;  %v720_v35 = vadd.f32 %v719_v31, %v718_v27  ;;  %v768_v36 = vadd.f32 %v767_v32, %v766_v28 }
 0x10e   :  { %v721_v37 = vpop.f32.mrf.mxu0  ;;  %v769_v38 = vpop.f32.mrf.mxu1 }
 0x10f   :  { %626 = vst [vmem:[#allocation8 + $0x10] sm:$0xff] %v594_v33  ;;  %642 = vst [vmem:[#allocation8 + $0x90] sm:$0xff] %v610_v34  ;;  %v563_v39 = vadd.f32 %v720_v35, %v950_v3  ;;  %v579_v40 = vadd.f32 %v768_v36, %v950_v3 }
 0x110   :  { %v722_v41 = vpop.f32.mrf.mxu0  ;;  %v770_v42 = vpop.f32.mrf.mxu1 }
 0x111   :  { %v595_v43 = vmax.f32 %v563_v39, 0.0  ;;  %v611_v44 = vmax.f32 %v579_v40, 0.0  ;;  %v723_v45 = vadd.f32 %v722_v41, %v721_v37  ;;  %v771_v46 = vadd.f32 %v770_v42, %v769_v38 }
 0x112   :  { %v724_v47 = vpop.f32.mrf.mxu0  ;;  %v772_v48 = vpop.f32.mrf.mxu1 }
 0x113   :  { %627 = vst [vmem:[#allocation8 + $0x18] sm:$0xff] %v595_v43  ;;  %643 = vst [vmem:[#allocation8 + $0x98] sm:$0xff] %v611_v44  ;;  %v564_v49 = vadd.f32 %v723_v45, %v950_v3  ;;  %v580_v50 = vadd.f32 %v771_v46, %v950_v3 }
 0x114   :  { %v725_v51 = vpop.f32.mrf.mxu0  ;;  %v773_v52 = vpop.f32.mrf.mxu1 }
 0x115   :  { %v596_v53 = vmax.f32 %v564_v49, 0.0  ;;  %v612_v54 = vmax.f32 %v580_v50, 0.0  ;;  %v726_v55 = vadd.f32 %v725_v51, %v724_v47  ;;  %v774_v56 = vadd.f32 %v773_v52, %v772_v48 }
 0x116   :  { %v727_v57 = vpop.f32.mrf.mxu0  ;;  %v775_v58 = vpop.f32.mrf.mxu1 }
 0x117   :  { %628 = vst [vmem:[#allocation8 + $0x20] sm:$0xff] %v596_v53  ;;  %644 = vst [vmem:[#allocation8 + $0xa0] sm:$0xff] %v612_v54  ;;  %v565_v59 = vadd.f32 %v726_v55, %v950_v3  ;;  %v581_v60 = vadd.f32 %v774_v56, %v950_v3 }
 0x118   :  { %v728_v61 = vpop.f32.mrf.mxu0  ;;  %v776_v62 = vpop.f32.mrf.mxu1 }
 0x119   :  { %v597_v63 = vmax.f32 %v565_v59, 0.0  ;;  %v613_v0 = vmax.f32 %v581_v60, 0.0  ;;  %v729_v1 = vadd.f32 %v728_v61, %v727_v57  ;;  %v777_v2 = vadd.f32 %v776_v62, %v775_v58 }
 0x11a   :  { %v730_v4 = vpop.f32.mrf.mxu0  ;;  %v778_v5 = vpop.f32.mrf.mxu1 }
 0x11b   :  { %629 = vst [vmem:[#allocation8 + $0x28] sm:$0xff] %v597_v63  ;;  %645 = vst [vmem:[#allocation8 + $0xa8] sm:$0xff] %v613_v0  ;;  %v566_v6 = vadd.f32 %v729_v1, %v950_v3  ;;  %v582_v7 = vadd.f32 %v777_v2, %v950_v3 }
 0x11c   :  { %v731_v8 = vpop.f32.mrf.mxu0  ;;  %v779_v9 = vpop.f32.mrf.mxu1 }
 0x11d   :  { %v598_v10 = vmax.f32 %v566_v6, 0.0  ;;  %v614_v11 = vmax.f32 %v582_v7, 0.0  ;;  %v732_v12 = vadd.f32 %v731_v8, %v730_v4  ;;  %v780_v13 = vadd.f32 %v779_v9, %v778_v5 }
 0x11e   :  { %v733_v14 = vpop.f32.mrf.mxu0  ;;  %v781_v15 = vpop.f32.mrf.mxu1 }
 0x11f   :  { %630 = vst [vmem:[#allocation8 + $0x30] sm:$0xff] %v598_v10  ;;  %646 = vst [vmem:[#allocation8 + $0xb0] sm:$0xff] %v614_v11  ;;  %v567_v16 = vadd.f32 %v732_v12, %v950_v3  ;;  %v583_v17 = vadd.f32 %v780_v13, %v950_v3 }
 0x120   :  { %v734_v18 = vpop.f32.mrf.mxu0  ;;  %v782_v19 = vpop.f32.mrf.mxu1 }
 0x121   :  { %v599_v20 = vmax.f32 %v567_v16, 0.0  ;;  %v615_v21 = vmax.f32 %v583_v17, 0.0  ;;  %v735_v22 = vadd.f32 %v734_v18, %v733_v14  ;;  %v783_v23 = vadd.f32 %v782_v19, %v781_v15 }
 0x122   :  { %v736_v24 = vpop.f32.mrf.mxu0  ;;  %v784_v25 = vpop.f32.mrf.mxu1 }
 0x123   :  { %631 = vst [vmem:[#allocation8 + $0x38] sm:$0xff] %v599_v20  ;;  %647 = vst [vmem:[#allocation8 + $0xb8] sm:$0xff] %v615_v21  ;;  %v568_v26 = vadd.f32 %v735_v22, %v950_v3  ;;  %v584_v27 = vadd.f32 %v783_v23, %v950_v3 }
 0x124   :  { %v737_v28 = vpop.f32.mrf.mxu0  ;;  %v785_v29 = vpop.f32.mrf.mxu1 }
 0x125   :  { %v600_v30 = vmax.f32 %v568_v26, 0.0  ;;  %v616_v31 = vmax.f32 %v584_v27, 0.0  ;;  %v738_v32 = vadd.f32 %v737_v28, %v736_v24  ;;  %v786_v33 = vadd.f32 %v785_v29, %v784_v25 }
 0x126   :  { %v739_v34 = vpop.f32.mrf.mxu0  ;;  %v787_v35 = vpop.f32.mrf.mxu1 }
 0x127   :  { %632 = vst [vmem:[#allocation8 + $0x40] sm:$0xff] %v600_v30  ;;  %648 = vst [vmem:[#allocation8 + $0xc0] sm:$0xff] %v616_v31  ;;  %v569_v36 = vadd.f32 %v738_v32, %v950_v3  ;;  %v585_v37 = vadd.f32 %v786_v33, %v950_v3 }
 0x128   :  { %v740_v38 = vpop.f32.mrf.mxu0  ;;  %v788_v39 = vpop.f32.mrf.mxu1 }
 0x129   :  { %v601_v40 = vmax.f32 %v569_v36, 0.0  ;;  %v617_v41 = vmax.f32 %v585_v37, 0.0  ;;  %v741_v42 = vadd.f32 %v740_v38, %v739_v34  ;;  %v789_v43 = vadd.f32 %v788_v39, %v787_v35 }
 0x12a   :  { %v742_v44 = vpop.f32.mrf.mxu0  ;;  %v790_v45 = vpop.f32.mrf.mxu1 }
 0x12b   :  { %633 = vst [vmem:[#allocation8 + $0x48] sm:$0xff] %v601_v40  ;;  %649 = vst [vmem:[#allocation8 + $0xc8] sm:$0xff] %v617_v41  ;;  %v570_v46 = vadd.f32 %v741_v42, %v950_v3  ;;  %v586_v47 = vadd.f32 %v789_v43, %v950_v3 }
 0x12c   :  { %v743_v48 = vpop.f32.mrf.mxu0  ;;  %v791_v49 = vpop.f32.mrf.mxu1 }
 0x12d   :  { %v602_v50 = vmax.f32 %v570_v46, 0.0  ;;  %v618_v51 = vmax.f32 %v586_v47, 0.0  ;;  %v744_v52 = vadd.f32 %v743_v48, %v742_v44  ;;  %v792_v53 = vadd.f32 %v791_v49, %v790_v45 }
 0x12e   :  { %v745_v54 = vpop.f32.mrf.mxu0  ;;  %v793_v55 = vpop.f32.mrf.mxu1 }
 0x12f   :  { %634 = vst [vmem:[#allocation8 + $0x50] sm:$0xff] %v602_v50  ;;  %650 = vst [vmem:[#allocation8 + $0xd0] sm:$0xff] %v618_v51  ;;  %v571_v56 = vadd.f32 %v744_v52, %v950_v3  ;;  %v587_v57 = vadd.f32 %v792_v53, %v950_v3 }
 0x130   :  { %v746_v58 = vpop.f32.mrf.mxu0  ;;  %v794_v59 = vpop.f32.mrf.mxu1 }
 0x131   :  { %v603_v60 = vmax.f32 %v571_v56, 0.0  ;;  %v619_v61 = vmax.f32 %v587_v57, 0.0  ;;  %v747_v62 = vadd.f32 %v746_v58, %v745_v54  ;;  %v795_v63 = vadd.f32 %v794_v59, %v793_v55 }
 0x132   :  { %v748_v0 = vpop.f32.mrf.mxu0  ;;  %v796_v1 = vpop.f32.mrf.mxu1 }
 0x133   :  { %635 = vst [vmem:[#allocation8 + $0x58] sm:$0xff] %v603_v60  ;;  %651 = vst [vmem:[#allocation8 + $0xd8] sm:$0xff] %v619_v61  ;;  %v572_v2 = vadd.f32 %v747_v62, %v950_v3  ;;  %v588_v4 = vadd.f32 %v795_v63, %v950_v3 }
 0x134   :  { %v749_v5 = vpop.f32.mrf.mxu0  ;;  %v797_v6 = vpop.f32.mrf.mxu1 }
 0x135   :  { %v604_v7 = vmax.f32 %v572_v2, 0.0  ;;  %v620_v8 = vmax.f32 %v588_v4, 0.0  ;;  %v750_v9 = vadd.f32 %v749_v5, %v748_v0  ;;  %v798_v10 = vadd.f32 %v797_v6, %v796_v1 }
 0x136   :  { %v751_v11 = vpop.f32.mrf.mxu0  ;;  %v799_v12 = vpop.f32.mrf.mxu1 }
 0x137   :  { %636 = vst [vmem:[#allocation8 + $0x60] sm:$0xff] %v604_v7  ;;  %652 = vst [vmem:[#allocation8 + $0xe0] sm:$0xff] %v620_v8  ;;  %v573_v13 = vadd.f32 %v750_v9, %v950_v3  ;;  %v589_v14 = vadd.f32 %v798_v10, %v950_v3 }
 0x138   :  { %v752_v15 = vpop.f32.mrf.mxu0  ;;  %v800_v16 = vpop.f32.mrf.mxu1 }
 0x139   :  { %v605_v17 = vmax.f32 %v573_v13, 0.0  ;;  %v621_v18 = vmax.f32 %v589_v14, 0.0  ;;  %v753_v19 = vadd.f32 %v752_v15, %v751_v11  ;;  %v801_v20 = vadd.f32 %v800_v16, %v799_v12 }
 0x13a   :  { %v754_v21 = vpop.f32.mrf.mxu0  ;;  %v802_v22 = vpop.f32.mrf.mxu1 }
 0x13b   :  { %637 = vst [vmem:[#allocation8 + $0x68] sm:$0xff] %v605_v17  ;;  %653 = vst [vmem:[#allocation8 + $0xe8] sm:$0xff] %v621_v18  ;;  %v574_v23 = vadd.f32 %v753_v19, %v950_v3  ;;  %v590_v24 = vadd.f32 %v801_v20, %v950_v3 }
 0x13c   :  { %v755_v25 = vpop.f32.mrf.mxu0  ;;  %v803_v26 = vpop.f32.mrf.mxu1 }
 0x13d   :  { %v606_v27 = vmax.f32 %v574_v23, 0.0  ;;  %v622_v28 = vmax.f32 %v590_v24, 0.0  ;;  %v756_v29 = vadd.f32 %v755_v25, %v754_v21  ;;  %v804_v30 = vadd.f32 %v803_v26, %v802_v22 }
 0x13f   :  { %638 = vst [vmem:[#allocation8 + $0x70] sm:$0xff] %v606_v27  ;;  %654 = vst [vmem:[#allocation8 + $0xf0] sm:$0xff] %v622_v28  ;;  %v575_v31 = vadd.f32 %v756_v29, %v950_v3  ;;  %v591_v32 = vadd.f32 %v804_v30, %v950_v3 }
 0x141   :  { %v607_v33 = vmax.f32 %v575_v31, 0.0  ;;  %v623_v34 = vmax.f32 %v591_v32, 0.0 }
 0x143   :  { %639 = vst [vmem:[#allocation8 + $0x78] sm:$0xff] %v607_v33  ;;  %655 = vst [vmem:[#allocation8 + $0xf8] sm:$0xff] %v623_v34 }
 0x144   :  { %897 = shalt.err (!%p894_p0)
}
 0x145   :  { %s919_s28 = smov 128   ;;  %s920_s29 = smov 8  }
 0x146   :  { %667 = dma.vmem_to_hbm [thread:$0]  %s662_s26, 4096, %s990_s3, [#allocation5], %s919_s28, %s919_s28, %s920_s29  }
 0x147   :  { %910 = dma.done.wait [#allocation5], 4096  }
 0x148   :  { %911 = vsyncadd [#allocation5], 4294963200 }
 0x149   :  { %671 = vsyncpa [#allocation4], 1 }
 0x14a   :  { %672 = vsyncpa [#allocation7], 1 }
 0x14b   :  { %673 = vsyncpa [#allocation5], 1 }

</bundles_post_ra>
